<compile_context>
chip_gen: v7x
topology: tpu7x:2x2x1
jax: 0.10.0
libtpu: 0.0.40
codegen_flags: <defaults>
</compile_context>

<pallas_src>
import functools

import jax
import jax.numpy as jnp
from jax.experimental import pallas as pl
from jax.experimental.pallas import tpu as pltpu


def _round_up(a, b):
    return (a + b - 1) // b * b


def _pick_tile(hw, w, cin, chid, cout, xbytes):
    """Largest lane tile (multiple of 128, <= 2048) whose working set fits the budget.

    Budget is chosen so the double-buffered pipeline stays well under v7x's 64 MiB
    per-TC VMEM; v5e/v6e (128 MiB) trivially fit the same tiles.
    """
    budget = 20 * 1024 * 1024
    t = min(2048, _round_up(hw, 128))

    def need(t):
        tw = _round_up(t + 2 * w + 2, 128)
        x_b = 2 * cin * tw * xbytes                          # input window, double buffered
        o_b = 2 * cout * t * 4                               # f32 output tile, double buffered
        w_b = 2 * ((9 * chid * cin + chid * cout) * xbytes   # conv weights
                   + (chid + cout) * 4 + 2 * t * 4)          # biases + masks
        mid = (6 * chid + 2 * cout) * t * 4                  # f32 partials / h / y headroom
        return x_b + o_b + w_b + mid

    while t > 128 and need(t) > budget:
        t -= 128
    return t


def encoder_output_net(x_nchw, params, *, compute_dtype=jnp.bfloat16):
    """Forward pass. x_nchw: (N, Cin, H, W) float32 -> (N, Cout, H, W) float32."""
    eps = 1e-5
    w1, b1 = params["w1"], params["b1"]
    gamma, beta = params["gamma"], params["beta"]
    mean, var = params["running_mean"], params["running_var"]
    w2, b2 = params["w2"], params["b2"]

    N, Cin, H, W = x_nchw.shape
    Chid = w1.shape[0]
    Cout = w2.shape[0]
    HW = H * W
    xbytes = jnp.dtype(compute_dtype).itemsize

    # ---- trace-time parameter folding: BN (eval) + conv1 bias into w1 / bias1 ----
    scale = gamma * jax.lax.rsqrt(var + eps)                                 # (Chid,)
    # (Chid, Cin, 3, 3) -> (ky, kx, Chid, Cin) -> (9, Chid, Cin), tap k = ky*3 + kx.
    w1_taps = (jnp.transpose(w1, (2, 3, 0, 1)).reshape(9, Chid, Cin)
               * scale[None, :, None]).astype(compute_dtype)
    bias1 = ((b1 - mean) * scale + beta).reshape(Chid, 1).astype(jnp.float32)
    w2_f = w2[:, :, 0, 0].astype(compute_dtype)                              # (Cout, Chid)
    bias2 = b2.reshape(Cout, 1).astype(jnp.float32)
    # NOTE: Cin is left un-padded; Mosaic sublane-pads the small contraction internally.

    # ---- tiling over the flattened spatial axis (always lane-dense, 128-multiple) ----
    T = _pick_tile(HW, W, Cin, Chid, Cout, xbytes)
    n_t = -(-HW // T)
    L_out = n_t * T                      # padded flat output length (garbage tail if ragged)
    halo = 2 * W + 2                     # largest tap offset (dy=2, dx=2)
    Tw = _round_up(T + halo, 128)        # per-tile input window incl. halo
    L_in = (n_t - 1) * T + Tw

    # ---- zero-padded flat input + per-tile halo windows (only extra HBM copies) ----
    # Flat layout: [1 front zero][top zero row (W)][x rows, H*W][bottom zero row + tail zeros]
    # Output flat index q = r*W + w; tap (dy, dx) reads flat position q + dy*W + dx.
    lead = 1 + W
    tail = L_in - lead - HW              # always >= W + 1 (covers the bottom zero row)
    xf = x_nchw.reshape(N, Cin, HW).astype(compute_dtype)
    pf = jnp.concatenate(
        [jnp.zeros((N, Cin, lead), compute_dtype), xf,
         jnp.zeros((N, Cin, tail), compute_dtype)], axis=-1)                 # (N, Cin, L_in)
    windows = jnp.stack([pf[:, :, t * T: t * T + Tw] for t in range(n_t)],
                        axis=1).reshape(N * n_t, Cin, Tw)                    # (N*n_t, Cin, Tw)

    # Left/right border masks for the dx=0 / dx=2 tap groups, per output flat position.
    col = jnp.arange(L_out, dtype=jnp.int32) % W
    masks = jnp.stack([col > 0, col < W - 1]).astype(jnp.float32)            # (2, L_out)

    def kernel(x_ref, m_ref, w1_ref, b1_ref, w2_ref, b2_ref, o_ref):
        # x_ref : (1, Cin, Tw)    flat input window incl. halo (compute_dtype)
        # m_ref : (2, T)          f32 left/right border masks
        # w1_ref: (9, Chid, Cin)  conv1 taps with BN scale folded in
        # b1_ref: (Chid, 1)       folded conv1 bias + BN shift (f32)
        # w2_ref: (Cout, Chid)    conv2 (1x1) weight
        # b2_ref: (Cout, 1)       conv2 bias (f32)
        # o_ref : (1, Cout, T)    f32 output tile (lane-dense, T % 128 == 0)
        xw = x_ref[0]                                                        # (Cin, Tw)
        parts = []
        for dx in range(3):              # group taps by dx so one mask covers 3 taps
            acc = None
            for dy in range(3):
                off = dy * W + dx        # static lane offset of this tap
                xt = xw[:, off:off + T]                                      # (Cin, T)
                d = jnp.dot(w1_ref[dy * 3 + dx], xt,
                            preferred_element_type=jnp.float32)              # (Chid, T) f32
                acc = d if acc is None else acc + d
            parts.append(acc)
        h = parts[1] + m_ref[0:1, :] * parts[0] + m_ref[1:2, :] * parts[2]
        h = jnp.maximum(h + b1_ref[...], 0.0)                                # bias + ReLU
        y = jnp.dot(w2_ref[...], h.astype(w2_ref.dtype),
                    preferred_element_type=jnp.float32)                      # (Cout, T) f32
        o_ref[0] = (y + b2_ref[...]).astype(o_ref.dtype)

    flops = 2 * N * n_t * T * (9 * Cin * Chid + Chid * Cout)
    bytes_accessed = int(windows.size * xbytes + masks.size * 4
                         + w1_taps.size * xbytes + w2_f.size * xbytes
                         + (Chid + Cout) * 4 + N * Cout * L_out * 4)

    out_flat = pl.pallas_call(
        kernel,
        out_shape=jax.ShapeDtypeStruct((N, Cout, L_out), jnp.float32),
        grid_spec=pltpu.PrefetchScalarGridSpec(
            num_scalar_prefetch=0,
            grid=(N, n_t),
            in_specs=[
                pl.BlockSpec((1, Cin, Tw), lambda n, t: (n * n_t + t, 0, 0)),
                pl.BlockSpec((2, T), lambda n, t: (0, t)),
                pl.BlockSpec((9, Chid, Cin), lambda n, t: (0, 0, 0)),
                pl.BlockSpec((Chid, 1), lambda n, t: (0, 0)),
                pl.BlockSpec((Cout, Chid), lambda n, t: (0, 0)),
                pl.BlockSpec((Cout, 1), lambda n, t: (0, 0)),
            ],
            out_specs=pl.BlockSpec((1, Cout, T), lambda n, t: (n, 0, t)),
        ),
        compiler_params=pltpu.CompilerParams(
            dimension_semantics=("parallel", "parallel"),
            vmem_limit_bytes=40 * 1024 * 1024),            # safe on v7x (64 MiB/TC)
        cost_estimate=pl.CostEstimate(flops=flops, transcendentals=0,
                                      bytes_accessed=bytes_accessed),
    )(windows, masks, w1_taps, bias1, w2_f, bias2)

    if L_out != HW:
        out_flat = out_flat[:, :, :HW]   # drop padded garbage tail (ragged H*W only)
    return out_flat.reshape(N, Cout, H, W)                 # NCHW, free reshape


def _reference(x_nchw, params):
    """Pure-JAX reference for correctness checking."""
    eps = 1e-5
    y = jax.lax.conv_general_dilated(
        x_nchw, params["w1"], window_strides=(1, 1), padding=((1, 1), (1, 1)),
        dimension_numbers=("NCHW", "OIHW", "NCHW"))
    y = y + params["b1"][None, :, None, None]
    scale = params["gamma"] / jnp.sqrt(params["running_var"] + eps)
    shift = params["beta"] - params["running_mean"] * scale
    y = y * scale[None, :, None, None] + shift[None, :, None, None]
    y = jnp.maximum(y, 0.0)
    y = jax.lax.conv_general_dilated(
        y, params["w2"], window_strides=(1, 1), padding=((0, 0), (0, 0)),
        dimension_numbers=("NCHW", "OIHW", "NCHW"))
    y = y + params["b2"][None, :, None, None]
    return y


def make_params(key, input_dim, output_dim, hidden_dim):
    """Deterministic synthetic parameters (PyTorch weight layouts)."""
    ks = jax.random.split(key, 8)
    return {
        "w1": jax.random.normal(ks[0], (hidden_dim, input_dim, 3, 3), jnp.float32) * 0.1,
        "b1": jax.random.normal(ks[1], (hidden_dim,), jnp.float32) * 0.1,
        "gamma": 1.0 + 0.1 * jax.random.normal(ks[2], (hidden_dim,), jnp.float32),
        "beta": 0.1 * jax.random.normal(ks[3], (hidden_dim,), jnp.float32),
        "running_mean": 0.05 * jax.random.normal(ks[4], (hidden_dim,), jnp.float32),
        "running_var": 1.0 + 0.1 * jax.nn.softplus(
            jax.random.normal(ks[5], (hidden_dim,), jnp.float32)),
        "w2": jax.random.normal(ks[6], (output_dim, hidden_dim, 1, 1), jnp.float32) * 0.1,
        "b2": jax.random.normal(ks[7], (output_dim,), jnp.float32) * 0.1,
    }


if __name__ == "__main__":
    key = jax.random.PRNGKey(0)
    k_x, k_p = jax.random.split(key)

    # Small shapes: batch=2, input_dim=4, spatial=16x16, hidden=32, output=16.
    N, Cin, H, W = 2, 4, 16, 16
    Chid, Cout = 32, 16

    x = jax.random.normal(k_x, (N, Cin, H, W), jnp.float32)
    params = make_params(k_p, Cin, Cout, Chid)

    ref = jax.block_until_ready(_reference(x, params))

    # f32 compute path: tight semantic check against the XLA conv reference.
    f32_fn = jax.jit(functools.partial(encoder_output_net, compute_dtype=jnp.float32))
    out_f32 = jax.block_until_ready(f32_fn(x, params))
    assert out_f32.shape == (N, Cout, H, W), out_f32.shape
    err_f32 = float(jnp.max(jnp.abs(out_f32 - ref)))
    assert jnp.allclose(out_f32, ref, atol=2e-4, rtol=2e-4), err_f32

    # bf16 default path (f32 accumulation via preferred_element_type): loose check.
    bf16_fn = jax.jit(encoder_output_net)
    out_bf16 = jax.block_until_ready(bf16_fn(x, params))
    assert out_bf16.shape == (N, Cout, H, W), out_bf16.shape
    err_bf16 = float(jnp.max(jnp.abs(out_bf16 - ref)))
    assert jnp.allclose(out_bf16, ref, atol=6e-2, rtol=6e-2), err_bf16

    print("KERNEL_OK")
</pallas_src>

<mosaic_0001>
module attributes {stable_mosaic.version = 11 : i64} {
  func.func @kernel(%arg0: i32, %arg1: i32, %arg2: memref<1x4x384xf32, #tpu.memory_space<vmem>>, %arg3: memref<2x256xf32, #tpu.memory_space<vmem>>, %arg4: memref<9x32x4xf32, #tpu.memory_space<vmem>>, %arg5: memref<32x1xf32, #tpu.memory_space<vmem>>, %arg6: memref<16x32xf32, #tpu.memory_space<vmem>>, %arg7: memref<16x1xf32, #tpu.memory_space<vmem>>, %arg8: memref<1x16x256xf32, #tpu.memory_space<vmem>>) attributes {dimension_semantics = [#tpu.dimension_semantics<parallel>, #tpu.dimension_semantics<parallel>], iteration_bounds = array<i64: 2, 1>, scalar_prefetch = 0 : i64, scratch_operands = 0 : i64, tpu.core_type = #tpu.core_type<tc>, window_params = [{transform_indices = @transform_0, window_bounds = array<i64: 1, 4, 384>}, {transform_indices = @transform_1, window_bounds = array<i64: 2, 256>}, {pipeline_mode = #tpu.pipeline_mode<synchronous>, transform_indices = @transform_2, window_bounds = array<i64: 9, 32, 4>}, {pipeline_mode = #tpu.pipeline_mode<synchronous>, transform_indices = @transform_3, window_bounds = array<i64: 32, 1>}, {pipeline_mode = #tpu.pipeline_mode<synchronous>, transform_indices = @transform_4, window_bounds = array<i64: 16, 32>}, {pipeline_mode = #tpu.pipeline_mode<synchronous>, transform_indices = @transform_5, window_bounds = array<i64: 16, 1>}, {transform_indices = @transform_6, window_bounds = array<i64: 1, 16, 256>}]} {
    %c0 = arith.constant 0 : index
    %c0_0 = arith.constant 0 : index
    %c0_1 = arith.constant 0 : index
    %0 = vector.load %arg2[%c0, %c0_0, %c0_1] : memref<1x4x384xf32, #tpu.memory_space<vmem>>, vector<1x4x384xf32>
    %1 = vector.shape_cast %0 : vector<1x4x384xf32> to vector<4x384xf32>
    %2 = vector.extract_strided_slice %1 {offsets = [0, 0], sizes = [4, 256], strides = [1, 1]} : vector<4x384xf32> to vector<4x256xf32>
    %c0_2 = arith.constant 0 : index
    %c0_3 = arith.constant 0 : index
    %c0_4 = arith.constant 0 : index
    %3 = vector.load %arg4[%c0_2, %c0_3, %c0_4] : memref<9x32x4xf32, #tpu.memory_space<vmem>>, vector<1x32x4xf32>
    %4 = vector.shape_cast %3 : vector<1x32x4xf32> to vector<32x4xf32>
    %cst = arith.constant dense<0.000000e+00> : vector<32x256xf32>
    %5 = tpu.matmul %4, %2, %cst {dimension_numbers = #tpu.dot_dimension_numbers<[1], [0], [0], [1], [0, 0, 1, 1], [], []>} : vector<32x4xf32>, vector<4x256xf32>, vector<32x256xf32> -> vector<32x256xf32>
    %6 = vector.extract_strided_slice %1 {offsets = [0, 16], sizes = [4, 256], strides = [1, 1]} : vector<4x384xf32> to vector<4x256xf32>
    %c3 = arith.constant 3 : index
    %c0_5 = arith.constant 0 : index
    %c0_6 = arith.constant 0 : index
    %7 = vector.load %arg4[%c3, %c0_5, %c0_6] : memref<9x32x4xf32, #tpu.memory_space<vmem>>, vector<1x32x4xf32>
    %8 = vector.shape_cast %7 : vector<1x32x4xf32> to vector<32x4xf32>
    %cst_7 = arith.constant dense<0.000000e+00> : vector<32x256xf32>
    %9 = tpu.matmul %8, %6, %cst_7 {dimension_numbers = #tpu.dot_dimension_numbers<[1], [0], [0], [1], [0, 0, 1, 1], [], []>} : vector<32x4xf32>, vector<4x256xf32>, vector<32x256xf32> -> vector<32x256xf32>
    %10 = arith.addf %5, %9 : vector<32x256xf32>
    %11 = vector.extract_strided_slice %1 {offsets = [0, 32], sizes = [4, 256], strides = [1, 1]} : vector<4x384xf32> to vector<4x256xf32>
    %c6 = arith.constant 6 : index
    %c0_8 = arith.constant 0 : index
    %c0_9 = arith.constant 0 : index
    %12 = vector.load %arg4[%c6, %c0_8, %c0_9] : memref<9x32x4xf32, #tpu.memory_space<vmem>>, vector<1x32x4xf32>
    %13 = vector.shape_cast %12 : vector<1x32x4xf32> to vector<32x4xf32>
    %cst_10 = arith.constant dense<0.000000e+00> : vector<32x256xf32>
    %14 = tpu.matmul %13, %11, %cst_10 {dimension_numbers = #tpu.dot_dimension_numbers<[1], [0], [0], [1], [0, 0, 1, 1], [], []>} : vector<32x4xf32>, vector<4x256xf32>, vector<32x256xf32> -> vector<32x256xf32>
    %15 = arith.addf %10, %14 : vector<32x256xf32>
    %16 = vector.extract_strided_slice %1 {offsets = [0, 1], sizes = [4, 256], strides = [1, 1]} : vector<4x384xf32> to vector<4x256xf32>
    %c1 = arith.constant 1 : index
    %c0_11 = arith.constant 0 : index
    %c0_12 = arith.constant 0 : index
    %17 = vector.load %arg4[%c1, %c0_11, %c0_12] : memref<9x32x4xf32, #tpu.memory_space<vmem>>, vector<1x32x4xf32>
    %18 = vector.shape_cast %17 : vector<1x32x4xf32> to vector<32x4xf32>
    %cst_13 = arith.constant dense<0.000000e+00> : vector<32x256xf32>
    %19 = tpu.matmul %18, %16, %cst_13 {dimension_numbers = #tpu.dot_dimension_numbers<[1], [0], [0], [1], [0, 0, 1, 1], [], []>} : vector<32x4xf32>, vector<4x256xf32>, vector<32x256xf32> -> vector<32x256xf32>
    %20 = vector.extract_strided_slice %1 {offsets = [0, 17], sizes = [4, 256], strides = [1, 1]} : vector<4x384xf32> to vector<4x256xf32>
    %c4 = arith.constant 4 : index
    %c0_14 = arith.constant 0 : index
    %c0_15 = arith.constant 0 : index
    %21 = vector.load %arg4[%c4, %c0_14, %c0_15] : memref<9x32x4xf32, #tpu.memory_space<vmem>>, vector<1x32x4xf32>
    %22 = vector.shape_cast %21 : vector<1x32x4xf32> to vector<32x4xf32>
    %cst_16 = arith.constant dense<0.000000e+00> : vector<32x256xf32>
    %23 = tpu.matmul %22, %20, %cst_16 {dimension_numbers = #tpu.dot_dimension_numbers<[1], [0], [0], [1], [0, 0, 1, 1], [], []>} : vector<32x4xf32>, vector<4x256xf32>, vector<32x256xf32> -> vector<32x256xf32>
    %24 = arith.addf %19, %23 : vector<32x256xf32>
    %25 = vector.extract_strided_slice %1 {offsets = [0, 33], sizes = [4, 256], strides = [1, 1]} : vector<4x384xf32> to vector<4x256xf32>
    %c7 = arith.constant 7 : index
    %c0_17 = arith.constant 0 : index
    %c0_18 = arith.constant 0 : index
    %26 = vector.load %arg4[%c7, %c0_17, %c0_18] : memref<9x32x4xf32, #tpu.memory_space<vmem>>, vector<1x32x4xf32>
    %27 = vector.shape_cast %26 : vector<1x32x4xf32> to vector<32x4xf32>
    %cst_19 = arith.constant dense<0.000000e+00> : vector<32x256xf32>
    %28 = tpu.matmul %27, %25, %cst_19 {dimension_numbers = #tpu.dot_dimension_numbers<[1], [0], [0], [1], [0, 0, 1, 1], [], []>} : vector<32x4xf32>, vector<4x256xf32>, vector<32x256xf32> -> vector<32x256xf32>
    %29 = arith.addf %24, %28 : vector<32x256xf32>
    %30 = vector.extract_strided_slice %1 {offsets = [0, 2], sizes = [4, 256], strides = [1, 1]} : vector<4x384xf32> to vector<4x256xf32>
    %c2 = arith.constant 2 : index
    %c0_20 = arith.constant 0 : index
    %c0_21 = arith.constant 0 : index
    %31 = vector.load %arg4[%c2, %c0_20, %c0_21] : memref<9x32x4xf32, #tpu.memory_space<vmem>>, vector<1x32x4xf32>
    %32 = vector.shape_cast %31 : vector<1x32x4xf32> to vector<32x4xf32>
    %cst_22 = arith.constant dense<0.000000e+00> : vector<32x256xf32>
    %33 = tpu.matmul %32, %30, %cst_22 {dimension_numbers = #tpu.dot_dimension_numbers<[1], [0], [0], [1], [0, 0, 1, 1], [], []>} : vector<32x4xf32>, vector<4x256xf32>, vector<32x256xf32> -> vector<32x256xf32>
    %34 = vector.extract_strided_slice %1 {offsets = [0, 18], sizes = [4, 256], strides = [1, 1]} : vector<4x384xf32> to vector<4x256xf32>
    %c5 = arith.constant 5 : index
    %c0_23 = arith.constant 0 : index
    %c0_24 = arith.constant 0 : index
    %35 = vector.load %arg4[%c5, %c0_23, %c0_24] : memref<9x32x4xf32, #tpu.memory_space<vmem>>, vector<1x32x4xf32>
    %36 = vector.shape_cast %35 : vector<1x32x4xf32> to vector<32x4xf32>
    %cst_25 = arith.constant dense<0.000000e+00> : vector<32x256xf32>
    %37 = tpu.matmul %36, %34, %cst_25 {dimension_numbers = #tpu.dot_dimension_numbers<[1], [0], [0], [1], [0, 0, 1, 1], [], []>} : vector<32x4xf32>, vector<4x256xf32>, vector<32x256xf32> -> vector<32x256xf32>
    %38 = arith.addf %33, %37 : vector<32x256xf32>
    %39 = vector.extract_strided_slice %1 {offsets = [0, 34], sizes = [4, 256], strides = [1, 1]} : vector<4x384xf32> to vector<4x256xf32>
    %c8 = arith.constant 8 : index
    %c0_26 = arith.constant 0 : index
    %c0_27 = arith.constant 0 : index
    %40 = vector.load %arg4[%c8, %c0_26, %c0_27] : memref<9x32x4xf32, #tpu.memory_space<vmem>>, vector<1x32x4xf32>
    %41 = vector.shape_cast %40 : vector<1x32x4xf32> to vector<32x4xf32>
    %cst_28 = arith.constant dense<0.000000e+00> : vector<32x256xf32>
    %42 = tpu.matmul %41, %39, %cst_28 {dimension_numbers = #tpu.dot_dimension_numbers<[1], [0], [0], [1], [0, 0, 1, 1], [], []>} : vector<32x4xf32>, vector<4x256xf32>, vector<32x256xf32> -> vector<32x256xf32>
    %43 = arith.addf %38, %42 : vector<32x256xf32>
    %c0_29 = arith.constant 0 : index
    %c0_30 = arith.constant 0 : index
    %44 = vector.load %arg3[%c0_29, %c0_30] : memref<2x256xf32, #tpu.memory_space<vmem>>, vector<1x256xf32>
    %45 = vector.broadcast %44 : vector<1x256xf32> to vector<32x256xf32>
    %46 = arith.mulf %45, %15 : vector<32x256xf32>
    %47 = arith.addf %29, %46 : vector<32x256xf32>
    %c1_31 = arith.constant 1 : index
    %c0_32 = arith.constant 0 : index
    %48 = vector.load %arg3[%c1_31, %c0_32] : memref<2x256xf32, #tpu.memory_space<vmem>>, vector<1x256xf32>
    %49 = vector.broadcast %48 : vector<1x256xf32> to vector<32x256xf32>
    %50 = arith.mulf %49, %43 : vector<32x256xf32>
    %51 = arith.addf %47, %50 : vector<32x256xf32>
    %c0_33 = arith.constant 0 : index
    %c0_34 = arith.constant 0 : index
    %52 = vector.load %arg5[%c0_33, %c0_34] : memref<32x1xf32, #tpu.memory_space<vmem>>, vector<32x1xf32>
    %53 = vector.broadcast %52 : vector<32x1xf32> to vector<32x256xf32>
    %54 = arith.addf %51, %53 : vector<32x256xf32>
    %cst_35 = arith.constant 0.000000e+00 : f32
    %55 = vector.broadcast %cst_35 : f32 to vector<32x256xf32>
    %56 = arith.maximumf %54, %55 : vector<32x256xf32>
    %c0_36 = arith.constant 0 : index
    %c0_37 = arith.constant 0 : index
    %57 = vector.load %arg6[%c0_36, %c0_37] : memref<16x32xf32, #tpu.memory_space<vmem>>, vector<16x32xf32>
    %cst_38 = arith.constant dense<0.000000e+00> : vector<16x256xf32>
    %58 = tpu.matmul %57, %56, %cst_38 {dimension_numbers = #tpu.dot_dimension_numbers<[1], [0], [0], [1], [0, 0, 1, 1], [], []>} : vector<16x32xf32>, vector<32x256xf32>, vector<16x256xf32> -> vector<16x256xf32>
    %c0_39 = arith.constant 0 : index
    %c0_40 = arith.constant 0 : index
    %59 = vector.load %arg7[%c0_39, %c0_40] : memref<16x1xf32, #tpu.memory_space<vmem>>, vector<16x1xf32>
    %60 = vector.broadcast %59 : vector<16x1xf32> to vector<16x256xf32>
    %61 = arith.addf %58, %60 : vector<16x256xf32>
    %c0_41 = arith.constant 0 : index
    %c0_42 = arith.constant 0 : index
    %c0_43 = arith.constant 0 : index
    %62 = vector.load %arg8[%c0_41, %c0_42, %c0_43] : memref<1x16x256xf32, #tpu.memory_space<vmem>>, vector<1x16x256xf32>
    %63 = vector.shape_cast %62 : vector<1x16x256xf32> to vector<16x256xf32>
    %64 = vector.shape_cast %61 : vector<16x256xf32> to vector<1x16x256xf32>
    tpu.vector_store %arg8[%c0_41, %c0_42, %c0_43], %64 {strides = array<i32>} : memref<1x16x256xf32, #tpu.memory_space<vmem>>, vector<1x16x256xf32>,
    return
  }
  func.func @transform_0(%arg0: i32, %arg1: i32) -> (i32, i32, i32) {
    %c1_i32 = arith.constant 1 : i32
    %0 = arith.muli %arg0, %c1_i32 : i32
    %1 = arith.addi %0, %arg1 : i32
    %c0_i32 = arith.constant 0 : i32
    %c0_i32_0 = arith.constant 0 : i32
    %c0_i32_1 = arith.constant 0 : i32
    return %1, %c0_i32, %c0_i32_0 : i32, i32, i32
  }
  func.func @transform_1(%arg0: i32, %arg1: i32) -> (i32, i32) {
    %c0_i32 = arith.constant 0 : i32
    %c0_i32_0 = arith.constant 0 : i32
    return %c0_i32, %arg1 : i32, i32
  }
  func.func @transform_2(%arg0: i32, %arg1: i32) -> (i32, i32, i32) {
    %c0_i32 = arith.constant 0 : i32
    %c0_i32_0 = arith.constant 0 : i32
    %c0_i32_1 = arith.constant 0 : i32
    %c0_i32_2 = arith.constant 0 : i32
    return %c0_i32, %c0_i32_0, %c0_i32_1 : i32, i32, i32
  }
  func.func @transform_3(%arg0: i32, %arg1: i32) -> (i32, i32) {
    %c0_i32 = arith.constant 0 : i32
    %c0_i32_0 = arith.constant 0 : i32
    %c0_i32_1 = arith.constant 0 : i32
    return %c0_i32, %c0_i32_0 : i32, i32
  }
  func.func @transform_4(%arg0: i32, %arg1: i32) -> (i32, i32) {
    %c0_i32 = arith.constant 0 : i32
    %c0_i32_0 = arith.constant 0 : i32
    %c0_i32_1 = arith.constant 0 : i32
    return %c0_i32, %c0_i32_0 : i32, i32
  }
  func.func @transform_5(%arg0: i32, %arg1: i32) -> (i32, i32) {
    %c0_i32 = arith.constant 0 : i32
    %c0_i32_0 = arith.constant 0 : i32
    %c0_i32_1 = arith.constant 0 : i32
    return %c0_i32, %c0_i32_0 : i32, i32
  }
  func.func @transform_6(%arg0: i32, %arg1: i32) -> (i32, i32, i32) {
    %c0_i32 = arith.constant 0 : i32
    %c0_i32_0 = arith.constant 0 : i32
    return %arg0, %c0_i32, %arg1 : i32, i32, i32
  }
}

</mosaic_0001>

<bundles_post_ra>
// kernel: encoder_output_net.1
= control target key start
LH: loop header
LB: loop body
LE: loop exit
PB: predicated region body
PF: predicated region fallthrough
CT: control target
= control target key end

     0   :  { %s1957_s21 = smov 0   ;;  %s1959_s22 = smov 0   ;;  %s2258_s0 = inlined_call_operand.vmem [shape: f32[2,4,384], index: 0, kind: input, shape index: {}]   ;;  %s2259_s1 = inlined_call_operand.vmem [shape: f32[2,256], index: 1, kind: input, shape index: {}]   ;;  %s2260_s2 = inlined_call_operand.vmem [shape: f32[9,32,4], index: 2, kind: input, shape index: {}]   ;;  %s2261_s3 = inlined_call_operand.vmem [shape: f32[32,1], index: 3, kind: input, shape index: {}]   ;;  %s2262_s4 = inlined_call_operand.vmem [shape: f32[16,32], index: 4, kind: input, shape index: {}]   ;;  %s2263_s5 = inlined_call_operand.vmem [shape: f32[16,1], index: 5, kind: input, shape index: {}]   ;;  %s2264_s6 = inlined_call_operand.vmem [shape: f32[2,16,256], index: 6, kind: output, shape index: {}]  }
   0x1   :  { %s1961_s23 = smov 0  }
   0x2 LB: > { %s28_s24 = sadd.s32 1, %s1906_s22  ;;  %p1696_p0 = scmp.ge.s32.totalorder %s1910_s23, 1  ;;  %s1910_s23 = sphi %s1961_s23, %s16_s23   ;;  %s1906_s22 = sphi %s1959_s22, %s2266_s22   ;;  %s1902_s21 = sphi %s1957_s21, %s2265_s21  }
   0x3   : > { %p30_p1 = scmp.ge.s32.totalorder %s28_s24, 2  ;;  %p241_p2 = scmp.lt.s32.totalorder %s1910_s23, 3 }
   0x5   : > { %s2268_s24 = smov (%p30_p1, %s28_s24), 0  ;;  %p242_p3 = pnand %p1696_p0, %p241_p2 }
   0x6   : > { %p282_p4 = scmp.lt.s32.totalorder (!%p242_p3), %s1902_s21, 1  ;;  %v1912_v0 = vmov (!%p242_p3), 0.0   ;;  %vm340_vm0 = vcmask (!%p242_p3), 1043456   ;;  %s1913_s29 = smov (!%p242_p3), 112   ;;  %v306_v3 = vld [vmem:[%s2260_s2] sm:$0xff] (!%p242_p3)  ;;  %vm327_vm1 = vcmask (!%p242_p3), 31744  }
   0x7   : > { %245 = sbr.rel (%p242_p3) target bundleno = 658 (0x292), region = 44  ;;  %514 = vmatprep.mubr.f32.mxu0 (!%p242_p3), %v1912_v0  ;;  %409 = vmatprep.mubr.f32.mxu1 (!%p242_p3), %v1912_v0  ;;  %s1914_s8 = smov (!%p242_p3), 96   ;;  %v307_v5 = vld [vmem:[%s2260_s2 + $0x8] sm:$0xff] (!%p242_p3)  ;;  %v308_v6 = vld [vmem:[%s2260_s2 + $0x10] sm:$0xff] (!%p242_p3)  ;;  %v1453_v8 = vld [vmem:[%s2261_s3] sm:$0xff] (!%p242_p3)  ;;  %v1921_v9 = vmov (!%p242_p3), 0  }
   0x8   : > { %s1915_s13 = smov (!%p242_p3), 111   ;;  %s1916_s14 = smov (!%p242_p3), 110   ;;  %v1454_v7 = vld [vmem:[%s2261_s3 + $0x8] sm:$0xff] (!%p242_p3)  ;;  %1886 = vset.pattern.permute.xlu1 (!%p242_p3), %v1921_v9  ;;  %1885 = vset.pattern.permute.xlu0 (!%p242_p3), %v1921_v9  ;;  %v1455_v10 = vld [vmem:[%s2261_s3 + $0x10] sm:$0xff] (!%p242_p3)  ;;  %v1456_v11 = vld [vmem:[%s2261_s3 + $0x18] sm:$0xff] (!%p242_p3)  ;;  %vm324_vm2 = vcmask (!%p242_p3), 916480  }
   0x9   : > { %s1917_s15 = smov (!%p242_p3), 127   ;;  %s1918_s16 = smov (!%p242_p3), 126   ;;  %v1495_v12 = vld [vmem:[%s2263_s5] sm:$0xff] (!%p242_p3)  ;;  %v1496_v13 = vld [vmem:[%s2263_s5 + $0x8] sm:$0xff] (!%p242_p3)  ;;  %vm550_vm3 = vcmask (!%p242_p3), 785408   ;;  %vm682_vm4 = vcmask (!%p242_p3), 908288  }
   0xa   : > { %s1919_s17 = smov (!%p242_p3), 95   ;;  %s1920_s18 = smov (!%p242_p3), 94   ;;  %v1700_v19 = vld [vmem:[%s2260_s2 + $0x60] sm:$0xff] (!%p242_p3)  ;;  %v1701_v25 = vld [vmem:[%s2260_s2 + $0x68] sm:$0xff] (!%p242_p3)  ;;  %v1702_v30 = vld [vmem:[%s2260_s2 + $0x70] sm:$0xff] (!%p242_p3)  ;;  %vm1047_vm5 = vcmask (!%p242_p3), 900096  }
   0xb   : > { %v1716_v26 = vld [vmem:[%s2260_s2 + $0xc0] sm:$0xff] (!%p242_p3)  ;;  %v1717_v31 = vld [vmem:[%s2260_s2 + $0xc8] sm:$0xff] (!%p242_p3)  ;;  %v1703_v35 = vld [vmem:[%s2260_s2 + $0x78] sm:$0xff] (!%p242_p3)  ;;  %vm796_vm6 = vcmask (!%p242_p3), 1039360   ;;  %vm1161_vm7 = vcmask (!%p242_p3), 1031168   ;;  %vm915_vm8 = vcmask (!%p242_p3), 777216  }
   0xc   : > { %v1718_v36 = vld [vmem:[%s2260_s2 + $0xd0] sm:$0xff] (!%p242_p3)  ;;  %v1719_v40 = vld [vmem:[%s2260_s2 + $0xd8] sm:$0xff] (!%p242_p3)  ;;  %v1760_v44 = vld [vmem:[%s2260_s2 + $0xa0] sm:$0xff] (!%p242_p3)  ;;  %vm1280_vm9 = vcmask (!%p242_p3), 769024   ;;  %vm1507_vm10 = vcmask (!%p242_p3), 261120  }
   0xd   : > { %v309_v43 = vld [vmem:[%s2260_s2 + $0x18] sm:$0xff] (!%p242_p3)  ;;  %v1730_v50 = vld [vmem:[%s2260_s2 + $0x80] sm:$0xff] (!%p242_p3)  ;;  %v1761_v51 = vld [vmem:[%s2260_s2 + $0xa8] sm:$0xff] (!%p242_p3) }
   0xe   : > { %s2270_s21 = smov (!%p282_p4, %s1902_s21), 1  ;;  %v1731_v56 = vld [vmem:[%s2260_s2 + $0x88] sm:$0xff]  ;;  %v1762_v57 = vld [vmem:[%s2260_s2 + $0xb0] sm:$0xff]  ;;  %v1763_v61 = vld [vmem:[%s2260_s2 + $0xb8] sm:$0xff] }
   0xf   : > { %s1850_s25 = smul.u32 12, %s2270_s21  ;;  %v1732_v60 = vld [vmem:[%s2260_s2 + $0x90] sm:$0xff]  ;;  %v1757_v9 = vld [vmem:[%s2260_s2 + $0x48] sm:$0xff] }
  0x11   : > { %s286_s28 = scalar_lea.vmem %s2258_s0, %s1850_s25 }
  0x12   : > { %v1983_v1 = vld [vmem:[%s286_s28] sm:$0xff]  ;;  %v305_v4 = vld [vmem:[%s286_s28 + $0x8] sm:$0xf] }
  0x13   : > { %318 = vrot.lane.b32.xlu1 %v1983_v1, %s1913_s29  ;;  %v1988_v2 = vcombine.high %v1983_v1, %v1983_v1 }
  0x15   : > { %320 = vrot.lane.b32.xlu0 %v1988_v2, %s1913_s29  ;;  %1710 = vmatprep.subr.msk.mxu0 %vm340_vm0, %v1988_v2 }
  0x16   : > { %1711 = vmatpush1.msk.msra.mxu0 %vm340_vm0, %v1983_v1 }
  0x17   : > { %546 = vrot.lane.b32.xlu1 %v1988_v2, %s1914_s8  ;;  %1712 = vmatmul.mubr.msk.f32.vlgmr.msra.gmra.mrb[0].mxu0 %vm327_vm1, %v306_v3  ;;  %v1756_v3 = vld [vmem:[%s2260_s2 + $0x40] sm:$0xff] }
  0x18   : > { %520 = vmatprep.mubr.f32.mxu0 %v1912_v0 }
  0x19   : > { %322 = vrot.lane.b32.xlu0 %v305_v4, %s1913_s29  ;;  %s1791_s29 = sshll.u32 %s2270_s21, 5 }
  0x1b   : > { %544 = vrot.lane.b32.xlu1 %v1983_v1, %s1914_s8  ;;  %1713 = vmatmul.mubr.msk.f32.gmra.mrb[2].mxu0 %vm327_vm1, %v307_v5 }
  0x1c   : > { %526 = vmatprep.mubr.f32.mxu0 %v1912_v0 }
  0x1d   : > { %548 = vrot.lane.b32.xlu0 %v305_v4, %s1914_s8  ;;  %s302_s8 = scalar_lea.vmem %s2264_s6, %s1791_s29 }
  0x1f   : > { %680 = vrot.lane.b32.xlu1 %v305_v4, %s1915_s13  ;;  %1714 = vmatmul.mubr.msk.f32.gmra.mrb[4].mxu0 %vm327_vm1, %v308_v6 }
  0x20   : > { %633 = vmatprep.mubr.f32.mxu0 %v1912_v0 }
  0x21   : > { %678 = vrot.lane.b32.xlu0 %v1988_v2, %s1915_s13 }
  0x23   : > { %1045 = vrot.lane.b32.xlu1 %v305_v4, %s1916_s14 }
  0x25   : > { %1043 = vrot.lane.b32.xlu0 %v1988_v2, %s1916_s14 }
  0x27   : > { %1041 = vrot.lane.b32.xlu1 %v1983_v1, %s1916_s14 }
  0x29   : > { %676 = vrot.lane.b32.xlu0 %v1983_v1, %s1915_s13 }
  0x2b   : > { %794 = vrot.lane.b32.xlu1 %v305_v4, %s1917_s15 }
  0x2d   : > { %792 = vrot.lane.b32.xlu0 %v1988_v2, %s1917_s15 }
  0x2f   : > { %1159 = vrot.lane.b32.xlu1 %v305_v4, %s1918_s16 }
  0x31   : > { %1157 = vrot.lane.b32.xlu0 %v1988_v2, %s1918_s16 }
  0x33   : > { %1155 = vrot.lane.b32.xlu1 %v1983_v1, %s1918_s16 }
  0x35   : > { %790 = vrot.lane.b32.xlu0 %v1983_v1, %s1917_s15 }
  0x37   : > { %913 = vrot.lane.b32.xlu1 %v305_v4, %s1919_s17 }
  0x39   : > { %911 = vrot.lane.b32.xlu0 %v1988_v2, %s1919_s17 }
  0x3b   : > { %1278 = vrot.lane.b32.xlu1 %v305_v4, %s1920_s18 }
  0x3d   : > { %1276 = vrot.lane.b32.xlu0 %v1988_v2, %s1920_s18 }
  0x3f   : > { %1274 = vrot.lane.b32.xlu1 %v1983_v1, %s1920_s18 }
  0x41   : > { %909 = vrot.lane.b32.xlu0 %v1983_v1, %s1919_s17 }
  0x43   : > { %1464 = vperm.xlu1 %1886, %v1454_v7  }
  0x45   : > { %1459 = vperm.xlu0 %1885, %v1453_v8   ;;  %v1726_v8 = vld [vmem:[%s2260_s2 + $0x20] sm:$0xff] }
  0x47   : > { %1469 = vperm.xlu1 %1886, %v1455_v10  }
  0x49   : > { %1474 = vperm.xlu0 %1885, %v1456_v11   ;;  %v1727_v11 = vld [vmem:[%s2260_s2 + $0x28] sm:$0xff] }
  0x4b   : > { %1499 = vperm.xlu1 %1886, %v1495_v12   ;;  %v1758_v12 = vld [vmem:[%s2260_s2 + $0x50] sm:$0xff] }
  0x4d   : > { %1504 = vperm.xlu0 %1885, %v1496_v13   ;;  %v1728_v13 = vld [vmem:[%s2260_s2 + $0x30] sm:$0xff] }
  0x85   : > { %v319_v14 = vpop.permute.xlu1 %318 }
  0x87   : > { %v321_v15 = vpop.permute.xlu0 %320 }
  0x88   : > { %v325_v21 = vsel %vm324_vm2, %v319_v14, %v321_v15  ;;  %v1759_v14 = vld [vmem:[%s2260_s2 + $0x58] sm:$0xff] }
  0x89   : > { %v547_v16 = vpop.permute.xlu1 %546 }
  0x8b   : > { %v323_v17 = vpop.permute.xlu0 %322 }
  0x8c   : > { %v326_v18 = vsel %vm324_vm2, %v321_v15, %v323_v17  ;;  %v1729_v15 = vld [vmem:[%s2260_s2 + $0x38] sm:$0xff]  ;;  %v1746_v17 = vld [vmem:[%s2260_s2 + $0xe0] sm:$0xff] }
  0x8d   : > { %v545_v20 = vpop.permute.xlu1 %544  ;;  %1704 = vmatprep.subr.msk.mxu1 %vm340_vm0, %v326_v18  ;;  %v1777_v18 = vld [vmem:[%s2260_s2 + $0x108] sm:$0xff] }
  0x8e   : > { %1705 = vmatpush1.msk.msra.mxu1 %vm340_vm0, %v325_v21  ;;  %v551_v22 = vsel %vm550_vm3, %v545_v20, %v547_v16  ;;  %v1778_v20 = vld [vmem:[%s2260_s2 + $0x110] sm:$0xff] }
  0x8f   : > { %1706 = vmatmul.mubr.msk.f32.vlgmr.msra.gmra.mrb[0].mxu1 %vm327_vm1, %v1700_v19  ;;  %v549_v23 = vpop.permute.xlu0 %548  ;;  %1800 = vmatprep.subr.msk.mxu1 %vm340_vm0, %v1988_v2  ;;  %v1733_v2 = vld [vmem:[%s2260_s2 + $0x98] sm:$0xff]  ;;  %v1747_v19 = vld [vmem:[%s2260_s2 + $0xe8] sm:$0xff]  ;;  %v1748_v21 = vld [vmem:[%s2260_s2 + $0xf0] sm:$0xff] }
  0x90   : > { %v552_v24 = vsel %vm550_vm3, %v547_v16, %v549_v23  ;;  %415 = vmatprep.mubr.f32.mxu1 %v1912_v0  ;;  %1801 = vmatpush1.msk.msra.mxu1 %vm340_vm0, %v1983_v1  ;;  %v1776_v16 = vld [vmem:[%s2260_s2 + $0x100] sm:$0xff]  ;;  %v1749_v23 = vld [vmem:[%s2260_s2 + $0xf8] sm:$0xff] }
  0x91   : > { %1720 = vmatprep.subr.msk.mxu0 %vm340_vm0, %v552_v24  ;;  %v681_v27 = vpop.permute.xlu1 %680 }
  0x92   : > { %1721 = vmatpush1.msk.msra.mxu0 %vm340_vm0, %v551_v22  ;;  %v1779_v22 = vld [vmem:[%s2260_s2 + $0x118] sm:$0xff] }
  0x93   : > { %1707 = vmatmul.mubr.msk.f32.gmra.mrb[2].mxu1 %vm327_vm1, %v1701_v25  ;;  %v679_v28 = vpop.permute.xlu0 %678  ;;  %1722 = vmatmul.mubr.msk.f32.vlgmr.msra.gmra.mrb[0].mxu0 %vm327_vm1, %v1716_v26 }
  0x94   : > { %v684_v29 = vsel %vm682_vm4, %v679_v28, %v681_v27  ;;  %421 = vmatprep.mubr.f32.mxu1 %v1912_v0  ;;  %639 = vmatprep.mubr.f32.mxu0 %v1912_v0 }
  0x95   : > { %1734 = vmatprep.subr.msk.mxu1 %vm340_vm0, %v684_v29  ;;  %v1046_v32 = vpop.permute.xlu1 %1045 }
  0x97   : > { %1708 = vmatmul.mubr.msk.f32.gmra.mrb[4].mxu1 %vm327_vm1, %v1702_v30  ;;  %v1044_v33 = vpop.permute.xlu0 %1043  ;;  %1723 = vmatmul.mubr.msk.f32.gmra.mrb[2].mxu0 %vm327_vm1, %v1717_v31 }
  0x98   : > { %v1049_v34 = vsel %vm1047_vm5, %v1044_v33, %v1046_v32  ;;  %427 = vmatprep.mubr.f32.mxu1 %v1912_v0  ;;  %645 = vmatprep.mubr.f32.mxu0 %v1912_v0 }
  0x99   : > { %1764 = vmatprep.subr.msk.mxu0 %vm340_vm0, %v1049_v34  ;;  %v1042_v37 = vpop.permute.xlu1 %1041 }
  0x9a   : > { %v1048_v38 = vsel %vm1047_vm5, %v1042_v37, %v1044_v33 }
  0x9b   : > { %1709 = vmatmul.mubr.msk.f32.gmra.mrb[6].mxu1 %vm327_vm1, %v1703_v35  ;;  %v677_v39 = vpop.permute.xlu0 %676  ;;  %1724 = vmatmul.mubr.msk.f32.gmra.mrb[4].mxu0 %vm327_vm1, %v1718_v36 }
  0x9c   : > { %1765 = vmatpush1.msk.msra.mxu0 %vm340_vm0, %v1048_v38  ;;  %651 = vmatprep.mubr.f32.mxu0 %v1912_v0  ;;  %v683_v47 = vsel %vm682_vm4, %v677_v39, %v679_v28 }
  0x9d   : > { %v795_v41 = vpop.permute.xlu1 %794  ;;  %532 = vmatprep.mubr.f32.mxu1 %v1912_v0 }
  0x9f   : > { %v793_v42 = vpop.permute.xlu0 %792  ;;  %1725 = vmatmul.mubr.msk.f32.gmra.mrb[6].mxu0 %vm327_vm1, %v1719_v40 }
  0xa0   : > { %1130 = vmatprep.mubr.f32.mxu0 %v1912_v0  ;;  %v798_v46 = vsel %vm796_vm6, %v793_v42, %v795_v41 }
  0xa1   : > { %v1160_v45 = vpop.permute.xlu1 %1159 }
  0xa3   : > { %1715 = vmatmul.mubr.msk.f32.vlgmr.msra.gmra.mrb[6].mxu1 %vm327_vm1, %v309_v43  ;;  %v1158_v48 = vpop.permute.xlu0 %1157  ;;  %1766 = vmatmul.mubr.msk.f32.vlgmr.msra.gmra.mrb[8].mxu0 %vm327_vm1, %v1760_v44 }
  0xa4   : > { %1735 = vmatpush1.msk.msra.mxu1 %vm340_vm0, %v683_v47  ;;  %v1163_v49 = vsel %vm1161_vm7, %v1158_v48, %v1160_v45  ;;  %765 = vmatprep.mubr.f32.mxu1 %v1912_v0 }
  0xa5   : > { %1740 = vmatprep.subr.msk.mxu1 %vm340_vm0, %v798_v46  ;;  %1136 = vmatprep.mubr.f32.mxu0 %v1912_v0  ;;  %v1156_v52 = vpop.permute.xlu1 %1155 }
  0xa6   : > { %v1162_v53 = vsel %vm1161_vm7, %v1156_v52, %v1158_v48  ;;  %1770 = vmatprep.subr.msk.mxu0 %vm340_vm0, %v1163_v49  ;;  %v1398_v48 = vlaneseq  ;;  %v1396_v52 = vld [vmem:[%s2259_s1] ss:$2 sm:$0x3] }
  0xa7   : > { %1736 = vmatmul.mubr.msk.f32.vlgmr.msra.gmra.mrb[8].mxu1 %vm327_vm1, %v1730_v50  ;;  %v791_v54 = vpop.permute.xlu0 %790  ;;  %1767 = vmatmul.mubr.msk.f32.gmra.mrb[10].mxu0 %vm327_vm1, %v1761_v51 }
  0xa8   : > { %v797_v55 = vsel %vm796_vm6, %v791_v54, %v793_v42  ;;  %771 = vmatprep.mubr.f32.mxu1 %v1912_v0  ;;  %1142 = vmatprep.mubr.f32.mxu0 %v1912_v0  ;;  %v1399_v49 = vshrl.u32 %v1398_v48, 7 }
  0xa9   : > { %1741 = vmatpush1.msk.msra.mxu1 %vm340_vm0, %v797_v55  ;;  %1771 = vmatpush1.msk.msra.mxu0 %vm340_vm0, %v1162_v53  ;;  %v914_v58 = vpop.permute.xlu1 %913  ;;  %v1786_v53 = vld [vmem:[%s2259_s1 + $0x1] ss:$2 sm:$0x3] }
  0xaa   : > { %v1400_v50 = vsub.s32 0, %v1399_v49  ;;  %v1404_v51 = vsub.s32 1, %v1399_v49 }
  0xab   : > { %1737 = vmatmul.mubr.msk.f32.gmra.mrb[10].mxu1 %vm327_vm1, %v1731_v56  ;;  %1768 = vmatmul.mubr.msk.f32.gmra.mrb[12].mxu0 %vm327_vm1, %v1762_v57  ;;  %v912_v59 = vpop.permute.xlu0 %911 }
  0xac   : > { %777 = vmatprep.mubr.f32.mxu1 %v1912_v0  ;;  %1148 = vmatprep.mubr.f32.mxu0 %v1912_v0  ;;  %v917_v62 = vsel %vm915_vm8, %v912_v59, %v914_v58  ;;  %v1401_v54 = vrot.slane %v1396_v52, %v1400_v50  ;;  %v1405_v56 = vrot.slane %v1396_v52, %v1404_v51 }
  0xad   : > { %v1279_v63 = vpop.permute.xlu1 %1278  ;;  %1750 = vmatprep.subr.msk.mxu1 %vm340_vm0, %v917_v62  ;;  %v1430_v57 = vrot.slane %v1786_v53, %v1400_v50 }
  0xaf   : > { %1738 = vmatmul.mubr.msk.f32.gmra.mrb[12].mxu1 %vm327_vm1, %v1732_v60  ;;  %1769 = vmatmul.mubr.msk.f32.gmra.mrb[14].mxu0 %vm327_vm1, %v1763_v61  ;;  %v1277_v1 = vpop.permute.xlu0 %1276 }
  0xb0   : > { %783 = vmatprep.mubr.f32.mxu1 %v1912_v0  ;;  %1244 = vmatprep.mubr.f32.mxu0 %v1912_v0  ;;  %v1282_v4 = vsel %vm1280_vm9, %v1277_v1, %v1279_v63 }
  0xb1   : > { %v1275_v5 = vpop.permute.xlu1 %1274  ;;  %1780 = vmatprep.subr.msk.mxu0 %vm340_vm0, %v1282_v4 }
  0xb2   : > { %v1281_v6 = vsel %vm1280_vm9, %v1275_v5, %v1277_v1 }
  0xb3   : > { %1739 = vmatmul.mubr.msk.f32.gmra.mrb[14].mxu1 %vm327_vm1, %v1733_v2  ;;  %1772 = vmatmul.mubr.msk.f32.vlgmr.msra.gmra.mrb[8].mxu0 %vm327_vm1, %v1756_v3  ;;  %v910_v7 = vpop.permute.xlu0 %909 }
  0xb4   : > { %879 = vmatprep.mubr.f32.mxu1 %v1912_v0  ;;  %1250 = vmatprep.mubr.f32.mxu0 %v1912_v0  ;;  %v916_v10 = vsel %vm915_vm8, %v910_v7, %v912_v59  ;;  %v1434_v59 = vrot.slane %v1786_v53, %v1404_v51 }
  0xb5   : > { %1781 = vmatpush1.msk.msra.mxu0 %vm340_vm0, %v1281_v6 }
  0xb7   : > { %1742 = vmatmul.mubr.msk.f32.vlgmr.msra.gmra.mrb[8].mxu1 %vm327_vm1, %v1726_v8  ;;  %1773 = vmatmul.mubr.msk.f32.gmra.mrb[10].mxu0 %vm327_vm1, %v1757_v9 }
  0xb8   : > { %1751 = vmatpush1.msk.msra.mxu1 %vm340_vm0, %v916_v10  ;;  %885 = vmatprep.mubr.f32.mxu1 %v1912_v0 }
  0xb9   : > { %1256 = vmatprep.mubr.f32.mxu0 %v1912_v0 }
  0xbb   : > { %1743 = vmatmul.mubr.msk.f32.gmra.mrb[10].mxu1 %vm327_vm1, %v1727_v11  ;;  %1774 = vmatmul.mubr.msk.f32.gmra.mrb[12].mxu0 %vm327_vm1, %v1758_v12 }
  0xbc   : > { %891 = vmatprep.mubr.f32.mxu1 %v1912_v0  ;;  %1262 = vmatprep.mubr.f32.mxu0 %v1912_v0 }
  0xbf   : > { %1744 = vmatmul.mubr.msk.f32.gmra.mrb[12].mxu1 %vm327_vm1, %v1728_v13  ;;  %1775 = vmatmul.mubr.msk.f32.gmra.mrb[14].mxu0 %vm327_vm1, %v1759_v14 }
  0xc0   : > { %897 = vmatprep.mubr.f32.mxu1 %v1912_v0  ;;  %1363 = vmatprep.mubr.f32.mxu0 %v1912_v0 }
  0xc3   : > { %1745 = vmatmul.mubr.msk.f32.gmra.mrb[14].mxu1 %vm327_vm1, %v1729_v15  ;;  %1782 = vmatmul.mubr.msk.f32.vlgmr.msra.gmra.mrb[8].mxu0 %vm327_vm1, %v1776_v16 }
  0xc4   : > { %998 = vmatprep.mubr.f32.mxu1 %v1912_v0  ;;  %1369 = vmatprep.mubr.f32.mxu0 %v1912_v0  ;;  %v1460_v8 = vpop.permute.xlu0 %1459 }
  0xc7   : > { %1752 = vmatmul.mubr.msk.f32.vlgmr.msra.gmra.mrb[8].mxu1 %vm327_vm1, %v1746_v17  ;;  %1783 = vmatmul.mubr.msk.f32.gmra.mrb[10].mxu0 %vm327_vm1, %v1777_v18 }
  0xc8   : > { %1004 = vmatprep.mubr.f32.mxu1 %v1912_v0  ;;  %1375 = vmatprep.mubr.f32.mxu0 %v1912_v0 }
  0xcb   : > { %1753 = vmatmul.mubr.msk.f32.gmra.mrb[10].mxu1 %vm327_vm1, %v1747_v19  ;;  %1784 = vmatmul.mubr.msk.f32.gmra.mrb[12].mxu0 %vm327_vm1, %v1778_v20  ;;  %v1465_v20 = vpop.permute.xlu1 %1464 }
  0xcc   : > { %1010 = vmatprep.mubr.f32.mxu1 %v1912_v0  ;;  %1381 = vmatprep.mubr.f32.mxu0 %v1912_v0 }
  0xcf   : > { %1754 = vmatmul.mubr.msk.f32.gmra.mrb[12].mxu1 %vm327_vm1, %v1748_v21  ;;  %1785 = vmatmul.mubr.msk.f32.gmra.mrb[14].mxu0 %vm327_vm1, %v1779_v22  ;;  %v1470_v52 = vpop.permute.xlu1 %1469 }
  0xd0   : > { %1016 = vmatprep.mubr.f32.mxu1 %v1912_v0 }
  0xd3   : > { %1755 = vmatmul.mubr.msk.f32.gmra.mrb[14].mxu1 %vm327_vm1, %v1749_v23 }
  0xd4   : > { %1578 = vmatprep.mubr.f32.mxu1 %v1912_v0 }
 0x162   : > { %v411_v24 = vpop.f32.mrb[0].mxu1 }
 0x163   : > { %v413_v25 = vpop.f32.mrb[1].mxu1 }
 0x166   : > { %v635_v26 = vpop.f32.mrb[0].mxu0  ;;  %v417_v27 = vpop.f32.mrb[2].mxu1 }
 0x167   : > { %v1802_v28 = vadd.f32 %v635_v26, %v411_v24  ;;  %v637_v29 = vpop.f32.mrb[1].mxu0  ;;  %v419_v30 = vpop.f32.mrb[3].mxu1 }
 0x168   : > { %v1803_v31 = vadd.f32 %v637_v29, %v413_v25 }
 0x169   : > { %v1408_v60 = vmul.f32 %v1802_v28, %v1401_v54 }
 0x16a   : > { %v641_v32 = vpop.f32.mrb[2].mxu0  ;;  %v423_v33 = vpop.f32.mrb[4].mxu1  ;;  %v1409_v63 = vmul.f32 %v1803_v31, %v1405_v56 }
 0x16b   : > { %v1804_v34 = vadd.f32 %v641_v32, %v417_v27  ;;  %v643_v35 = vpop.f32.mrb[3].mxu0  ;;  %v425_v36 = vpop.f32.mrb[5].mxu1 }
 0x16c   : > { %v1805_v37 = vadd.f32 %v643_v35, %v419_v30 }
 0x16d   : > { %v1410_v9 = vmul.f32 %v1804_v34, %v1401_v54 }
 0x16e   : > { %v647_v38 = vpop.f32.mrb[4].mxu0  ;;  %v1411_v13 = vmul.f32 %v1805_v37, %v1405_v56 }
 0x16f   : > { %v1806_v39 = vadd.f32 %v647_v38, %v423_v33  ;;  %v649_v40 = vpop.f32.mrb[5].mxu0 }
 0x170   : > { %v1807_v41 = vadd.f32 %v649_v40, %v425_v36 }
 0x171   : > { %v1412_v23 = vmul.f32 %v1806_v39, %v1401_v54 }
 0x172   : > { %v653_v42 = vpop.f32.mrb[6].mxu0  ;;  %v1413_v28 = vmul.f32 %v1807_v41, %v1405_v56 }
 0x173   : > { %v655_v43 = vpop.f32.mrb[7].mxu0 }
 0x176   : > { %v534_v44 = vpop.f32.mrb[6].mxu1 }
 0x177   : > { %v1808_v45 = vadd.f32 %v653_v42, %v534_v44  ;;  %v536_v46 = vpop.f32.mrb[7].mxu1 }
 0x178   : > { %v1809_v47 = vadd.f32 %v655_v43, %v536_v46 }
 0x179   : > { %v1414_v42 = vmul.f32 %v1808_v45, %v1401_v54 }
 0x17a   : > { %v1415_v48 = vmul.f32 %v1809_v47, %v1405_v56 }
 0x196   : > { %v1365_v55 = vpop.f32.mrb[8].mxu0 }
 0x197   : > { %v1367_v58 = vpop.f32.mrb[9].mxu0  ;;  %v1437_v1 = vmul.f32 %v1430_v57, %v1365_v55 }
 0x198   : > { %v1438_v5 = vmul.f32 %v1434_v59, %v1367_v58 }
 0x19a   : > { %v1000_v61 = vpop.f32.mrb[8].mxu1  ;;  %v1371_v62 = vpop.f32.mrb[10].mxu0 }
 0x19b   : > { %v1416_v2 = vadd.f32 %v1408_v60, %v1000_v61  ;;  %v1002_v3 = vpop.f32.mrb[9].mxu1  ;;  %v1373_v4 = vpop.f32.mrb[11].mxu0  ;;  %v1439_v14 = vmul.f32 %v1430_v57, %v1371_v62 }
 0x19c   : > { %v1417_v6 = vadd.f32 %v1409_v63, %v1002_v3  ;;  %v1440_v18 = vmul.f32 %v1434_v59, %v1373_v4  ;;  %v1475_v62 = vpop.permute.xlu0 %1474 }
 0x19d   : > { %v1445_v7 = vadd.f32 %v1437_v1, %v1416_v2 }
 0x19e   : > { %v1446_v10 = vadd.f32 %v1438_v5, %v1417_v6  ;;  %v1006_v11 = vpop.f32.mrb[10].mxu1  ;;  %v1377_v12 = vpop.f32.mrb[12].mxu0  ;;  %v1494_v5 = vld [vmem:[%s2262_s4 + $0x8] sm:$0xff] }
 0x19f   : > { %v1418_v15 = vadd.f32 %v1410_v9, %v1006_v11  ;;  %v1008_v16 = vpop.f32.mrb[11].mxu1  ;;  %v1379_v17 = vpop.f32.mrb[13].mxu0  ;;  %v1477_v21 = vadd.f32 %v1460_v8, %v1445_v7  ;;  %v1441_v30 = vmul.f32 %v1430_v57, %v1377_v12 }
 0x1a0   : > { %v1419_v19 = vadd.f32 %v1411_v13, %v1008_v16  ;;  %v1478_v24 = vadd.f32 %v1460_v8, %v1446_v10  ;;  %v1442_v35 = vmul.f32 %v1434_v59, %v1379_v17  ;;  %v1500_v6 = vpop.permute.xlu1 %1499  ;;  %v1505_v11 = vpop.permute.xlu0 %1504 }
 0x1a1   : > { %v1447_v22 = vadd.f32 %v1439_v14, %v1418_v15  ;;  %v1485_v37 = vmax.f32 %v1477_v21, 0.0 }
 0x1a2   : > { %v1448_v25 = vadd.f32 %v1440_v18, %v1419_v19  ;;  %v1012_v26 = vpop.f32.mrb[12].mxu1  ;;  %v1383_v27 = vpop.f32.mrb[14].mxu0  ;;  %v1486_v43 = vmax.f32 %v1478_v24, 0.0 }
 0x1a3   : > { %v1479_v29 = vadd.f32 %v1465_v20, %v1447_v22  ;;  %v1420_v31 = vadd.f32 %v1412_v23, %v1012_v26  ;;  %v1014_v32 = vpop.f32.mrb[13].mxu1  ;;  %v1385_v33 = vpop.f32.mrb[15].mxu0  ;;  %v1443_v50 = vmul.f32 %v1430_v57, %v1383_v27 }
 0x1a4   : > { %v1480_v34 = vadd.f32 %v1465_v20, %v1448_v25  ;;  %v1421_v36 = vadd.f32 %v1413_v28, %v1014_v32  ;;  %v1444_v53 = vmul.f32 %v1434_v59, %v1385_v33  ;;  %v1493_v59 = vld [vmem:[%s2262_s4] sm:$0xff] }
 0x1a5   : > { %v1487_v38 = vmax.f32 %v1479_v29, 0.0  ;;  %v1449_v40 = vadd.f32 %v1441_v30, %v1420_v31 }
 0x1a6   : > { %v1488_v44 = vmax.f32 %v1480_v34, 0.0  ;;  %v1450_v39 = vadd.f32 %v1442_v35, %v1421_v36  ;;  %v1018_v46 = vpop.f32.mrb[14].mxu1 }
 0x1a7   : > { %v1794_v49 = vpack.c.bf16 %v1487_v38, %v1485_v37  ;;  %v1422_v41 = vadd.f32 %v1414_v42, %v1018_v46  ;;  %v1020_v51 = vpop.f32.mrb[15].mxu1  ;;  %v1481_v60 = vadd.f32 %v1470_v52, %v1449_v40 }
 0x1a8   : > { %v1423_v55 = vadd.f32 %v1415_v48, %v1020_v51  ;;  %v1792_v58 = vpack.c.bf16 %v1488_v44, %v1486_v43  ;;  %v1482_v63 = vadd.f32 %v1470_v52, %v1450_v39 }
 0x1a9   : > { %v1451_v61 = vadd.f32 %v1443_v50, %v1422_v41  ;;  %v1489_v2 = vmax.f32 %v1481_v60, 0.0 }
 0x1aa   : > { %v1452_v1 = vadd.f32 %v1444_v53, %v1423_v55  ;;  %1793 = vmatprep.subr.bf16.mxu1 %v1792_v58  ;;  %v1490_v56 = vmax.f32 %v1482_v63, 0.0 }
 0x1ab   : > { %v1483_v45 = vadd.f32 %v1475_v62, %v1451_v61  ;;  %1795 = vmatpush1.bf16.msra.mxu1 %v1794_v49 }
 0x1ac   : > { %v1484_v54 = vadd.f32 %v1475_v62, %v1452_v1 }
 0x1ad   : > { %v1491_v47 = vmax.f32 %v1483_v45, 0.0 }
 0x1ae   : > { %v1492_v57 = vmax.f32 %v1484_v54, 0.0 }
 0x1af   : > { %v1798_v3 = vpack.c.bf16 %v1491_v47, %v1489_v2 }
 0x1b0   : > { %v1796_v4 = vpack.c.bf16 %v1492_v57, %v1490_v56 }
 0x1b2   : > { %1797 = vmatprep.subr.bf16.mxu1 %v1796_v4 }
 0x1b3   : > { %1799 = vmatpush1.bf16.msra.mxu1 %v1798_v3 }
 0x1b6   : > { %1787 = vmatmul.mubr.msk.f32.vlgmr.msra.gmra.mrb[16].mxu1 %vm1507_vm10, %v1493_v59 }
 0x1b7   : > { %1584 = vmatprep.mubr.f32.mxu1 %v1912_v0 }
 0x1ba   : > { %1788 = vmatmul.mubr.msk.f32.gmra.mrb[18].mxu1 %vm1507_vm10, %v1494_v5 }
 0x289   : > { %v1580_v7 = vpop.f32.mrb[16].mxu1 }
 0x28a   : > { %v1581_v8 = vadd.f32 %v1580_v7, %v1500_v6  ;;  %v1582_v9 = vpop.f32.mrb[17].mxu1 }
 0x28b   : > { %v1583_v10 = vadd.f32 %v1582_v9, %v1500_v6 }
 0x28c   : > { %1591 = vst [vmem:[%s302_s8] sm:$0xff] %v1581_v8 }
 0x28d   : > { %1592 = vst [vmem:[%s302_s8 + $0x8] sm:$0xff] %v1583_v10  ;;  %v1586_v12 = vpop.f32.mrb[18].mxu1 }
 0x28e   : > { %v1587_v0 = vadd.f32 %v1586_v12, %v1505_v11  ;;  %v1588_v13 = vpop.f32.mrb[19].mxu1 }
 0x28f   : > { %v1589_v14 = vadd.f32 %v1588_v13, %v1505_v11 }
 0x290   : > { %1593 = vst [vmem:[%s302_s8 + $0x10] sm:$0xff] %v1587_v0 }
 0x291   : > { %1594 = vst [vmem:[%s302_s8 + $0x18] sm:$0xff] %v1589_v14 }
 0x292 PF: > { %s16_s23 = sadd.s32 1, %s1910_s23   ;;  %s2265_s21 = smov %s1906_s22 }
 0x293   : > { %p13_p5 = scmp.ge.s32.totalorder %s16_s23, 4   ;;  %s2266_s22 = smov %s2268_s24 }
 0x295   :  { %15 = sbr.rel (!%p13_p5) target bundleno = 2 (0x2), region = 86 }

</bundles_post_ra>
